<compile_context>
chip_gen: v6e
topology: v6e:2x2x1
jax: 0.10.0
libtpu: 0.0.40
codegen_flags: <defaults>
</compile_context>

<pallas_src>
import functools

import jax
import jax.numpy as jnp
from jax.experimental import pallas as pl
from jax.experimental.pallas import tpu as pltpu


def _rbg_kernel(x_ref, so_ref, hs_ref, o_ref):
    # x_ref:  (D, TILE_N)   coordinates, transposed (N on the lane axis)
    # so_ref: (2F, D)       pre-scaled offsets: off[f,d]*sigma_f/2 (+0.5 for b)
    # hs_ref: (2F, 1)       sigma_f/2, duplicated per a/b column
    # o_ref:  (2F, TILE_N)  encoding (row 2f = a_f, row 2f+1 = b_f)
    x = x_ref[...]            # (D, TILE_N)
    so = so_ref[...]          # (2F, D)
    hs = hs_ref[...]          # (2F, 1)

    d_dim = x.shape[0]
    sq = None
    # D (domain_dim) is tiny and static -> unrolled Python loop; every op is
    # a full lane-dense (2F, TILE_N) vreg op (sublane/lane broadcasts only).
    for d in range(d_dim):
        u = x[d:d + 1, :] * hs + so[:, d:d + 1]        # (2F, TILE_N)
        t = (u - jnp.floor(u)) * 2.0 - 1.0
        tt = t * t
        sq = tt if sq is None else sq + tt

    o_ref[...] = (jnp.exp(sq * -4.0) * 2.0 - 1.0).astype(o_ref.dtype)


def _pick_tile_n(n, max_tile=4096):
    n_ceil = ((n + 127) // 128) * 128
    tile = min(max_tile, n_ceil)
    # Keep the grid at >= 2 steps when N allows it (v7x megacore sharding).
    if n_ceil // tile < 2 and n_ceil >= 256:
        tile = ((n_ceil // 2 + 127) // 128) * 128
    return tile


@functools.partial(jax.jit, static_argnames=("tile_n",))
def radial_basis_grid_encoding(x, offsets, sigma, *, tile_n=None):
    """x: (..., D); offsets: (F, D); sigma: (F,). Returns (..., 2*F)."""
    lead_shape = x.shape[:-1]
    d_dim = x.shape[-1]
    f_dim = sigma.shape[0]
    out_c = 2 * f_dim

    xf = x.reshape(-1, d_dim).astype(jnp.float32)
    n = xf.shape[0]
    if tile_n is None:
        tile_n = _pick_tile_n(n)
    n_pad = ((n + tile_n - 1) // tile_n) * tile_n

    # Transpose so N sits on the lane axis; pad to a whole number of tiles.
    xt = jnp.pad(xf, ((0, n_pad - n), (0, 0))).T                    # (D, N_pad)

    # sigma-derived constants (hoisted out of the kernel; no divides needed).
    sigma_f = sigma.astype(jnp.float32)
    half_sigma = jnp.repeat(sigma_f * 0.5, 2)[:, None]              # (2F, 1)
    base = offsets.astype(jnp.float32) * (sigma_f[:, None] * 0.5)   # (F, D)
    scaled_off = jnp.stack([base, base + 0.5], axis=1)              # (F, 2, D)
    scaled_off = scaled_off.reshape(out_c, d_dim)                   # (2F, D)

    grid = (n_pad // tile_n,)
    out = pl.pallas_call(
        _rbg_kernel,
        out_shape=jax.ShapeDtypeStruct((out_c, n_pad), jnp.float32),
        grid_spec=pltpu.PrefetchScalarGridSpec(
            num_scalar_prefetch=0,
            grid=grid,
            in_specs=[
                pl.BlockSpec((d_dim, tile_n), lambda i: (0, i)),
                pl.BlockSpec((out_c, d_dim), lambda i: (0, 0)),
                pl.BlockSpec((out_c, 1), lambda i: (0, 0)),
            ],
            out_specs=pl.BlockSpec((out_c, tile_n), lambda i: (0, i)),
        ),
        compiler_params=pltpu.CompilerParams(
            dimension_semantics=("parallel",)),
    )(xt, scaled_off, half_sigma)

    out = out[:, :n].T                                              # (N, 2F)
    return out.reshape(*lead_shape, out_c)


def reference(x, offsets, sigma):
    """Pure-JAX transcription of the PyTorch forward()."""
    lead_shape = x.shape[:-1]
    d_dim = offsets.shape[1]
    f_dim = sigma.shape[0]
    xf = x.reshape(-1, d_dim)
    x_a = xf[:, None, :] + offsets[None, :, :]                 # (N, F, D)
    x_b = x_a + (1.0 / sigma)[None, :, None]                   # (N, F, D)
    out = jnp.stack([x_a, x_b], axis=2)                        # (N, F, 2, D)
    c = (2.0 / sigma)[None, :, None, None]
    out = (out % c) * 2 - c
    out = (out ** 2).sum(3)                                    # (N, F, 2)
    out = out * (sigma ** 2)[None, :, None]
    out = out.reshape(-1, 2 * f_dim)
    out = jnp.exp(-out) * 2 - 1
    return out.reshape(*lead_shape, 2 * f_dim)


def make_params(key, domain_dim, num_frequencies, std):
    """Deterministic stand-in for __init__ (init_frequencies is abstract)."""
    # Geometric frequency ladder (already sorted ascending).
    sigma = std * (2.0 ** jnp.arange(num_frequencies, dtype=jnp.float32))
    u = jax.random.uniform(key, (num_frequencies, domain_dim), jnp.float32)
    offsets = (u * 2.0 - 1.0) % (2.0 / sigma[:, None])
    sigma = jnp.sort(sigma)
    return offsets, sigma


if __name__ == "__main__":
    key = jax.random.PRNGKey(0)
    k_x, k_off = jax.random.split(key)

    domain_dim = 2
    num_frequencies = 8
    std = 1.0

    offsets, sigma = make_params(k_off, domain_dim, num_frequencies, std)

    # x: batch of 2, 16x16 grid of 2-D coordinates in [-1, 1]
    x = jax.random.uniform(k_x, (2, 16, 16, domain_dim), jnp.float32,
                           minval=-1.0, maxval=1.0)

    out = radial_basis_grid_encoding(x, offsets, sigma)
    out = jax.block_until_ready(out)

    ref = reference(x, offsets, sigma)
    assert out.shape == (2, 16, 16, 2 * num_frequencies), out.shape

    # The algebraic rescale is mathematically identical to the reference but
    # rounds along a different path; the function's sensitivity (~4*sigma per
    # unit of input) amplifies ulp-level differences at the highest frequency
    # (sigma_max = 128 here), so use a sigma-aware tolerance.
    diff = jnp.abs(out - ref)
    max_diff = float(jnp.max(diff))
    mean_diff = float(jnp.mean(diff))
    assert max_diff < 5e-4, max_diff
    assert mean_diff < 5e-5, mean_diff

    print("KERNEL_OK")
</pallas_src>

<mosaic_0001>
module attributes {stable_mosaic.version = 11 : i64} {
  func.func @_rbg_kernel(%arg0: i32, %arg1: memref<2x256xf32, #tpu.memory_space<vmem>>, %arg2: memref<16x2xf32, #tpu.memory_space<vmem>>, %arg3: memref<16x1xf32, #tpu.memory_space<vmem>>, %arg4: memref<16x256xf32, #tpu.memory_space<vmem>>) attributes {dimension_semantics = [#tpu.dimension_semantics<parallel>], iteration_bounds = array<i64: 2>, scalar_prefetch = 0 : i64, scratch_operands = 0 : i64, tpu.core_type = #tpu.core_type<tc>, window_params = [{transform_indices = @transform_0, window_bounds = array<i64: 2, 256>}, {pipeline_mode = #tpu.pipeline_mode<synchronous>, transform_indices = @transform_1, window_bounds = array<i64: 16, 2>}, {pipeline_mode = #tpu.pipeline_mode<synchronous>, transform_indices = @transform_2, window_bounds = array<i64: 16, 1>}, {transform_indices = @transform_3, window_bounds = array<i64: 16, 256>}]} {
    %c0 = arith.constant 0 : index
    %c0_0 = arith.constant 0 : index
    %0 = vector.load %arg1[%c0, %c0_0] : memref<2x256xf32, #tpu.memory_space<vmem>>, vector<2x256xf32>
    %c0_1 = arith.constant 0 : index
    %c0_2 = arith.constant 0 : index
    %1 = vector.load %arg2[%c0_1, %c0_2] : memref<16x2xf32, #tpu.memory_space<vmem>>, vector<16x2xf32>
    %c0_3 = arith.constant 0 : index
    %c0_4 = arith.constant 0 : index
    %2 = vector.load %arg3[%c0_3, %c0_4] : memref<16x1xf32, #tpu.memory_space<vmem>>, vector<16x1xf32>
    %3 = vector.extract_strided_slice %0 {offsets = [0, 0], sizes = [1, 256], strides = [1, 1]} : vector<2x256xf32> to vector<1x256xf32>
    %4 = vector.broadcast %3 : vector<1x256xf32> to vector<16x256xf32>
    %5 = vector.broadcast %2 : vector<16x1xf32> to vector<16x256xf32>
    %6 = arith.mulf %4, %5 : vector<16x256xf32>
    %7 = vector.extract_strided_slice %1 {offsets = [0, 0], sizes = [16, 1], strides = [1, 1]} : vector<16x2xf32> to vector<16x1xf32>
    %8 = vector.broadcast %7 : vector<16x1xf32> to vector<16x256xf32>
    %9 = arith.addf %6, %8 : vector<16x256xf32>
    %10 = math.floor %9 : vector<16x256xf32>
    %11 = arith.subf %9, %10 : vector<16x256xf32>
    %cst = arith.constant 2.000000e+00 : f32
    %12 = vector.broadcast %cst : f32 to vector<16x256xf32>
    %13 = arith.mulf %11, %12 : vector<16x256xf32>
    %cst_5 = arith.constant 1.000000e+00 : f32
    %14 = vector.broadcast %cst_5 : f32 to vector<16x256xf32>
    %15 = arith.subf %13, %14 : vector<16x256xf32>
    %16 = arith.mulf %15, %15 : vector<16x256xf32>
    %17 = vector.extract_strided_slice %0 {offsets = [1, 0], sizes = [1, 256], strides = [1, 1]} : vector<2x256xf32> to vector<1x256xf32>
    %18 = vector.broadcast %17 : vector<1x256xf32> to vector<16x256xf32>
    %19 = vector.broadcast %2 : vector<16x1xf32> to vector<16x256xf32>
    %20 = arith.mulf %18, %19 : vector<16x256xf32>
    %21 = vector.extract_strided_slice %1 {offsets = [0, 1], sizes = [16, 1], strides = [1, 1]} : vector<16x2xf32> to vector<16x1xf32>
    %22 = vector.broadcast %21 : vector<16x1xf32> to vector<16x256xf32>
    %23 = arith.addf %20, %22 : vector<16x256xf32>
    %24 = math.floor %23 : vector<16x256xf32>
    %25 = arith.subf %23, %24 : vector<16x256xf32>
    %cst_6 = arith.constant 2.000000e+00 : f32
    %26 = vector.broadcast %cst_6 : f32 to vector<16x256xf32>
    %27 = arith.mulf %25, %26 : vector<16x256xf32>
    %cst_7 = arith.constant 1.000000e+00 : f32
    %28 = vector.broadcast %cst_7 : f32 to vector<16x256xf32>
    %29 = arith.subf %27, %28 : vector<16x256xf32>
    %30 = arith.mulf %29, %29 : vector<16x256xf32>
    %31 = arith.addf %16, %30 : vector<16x256xf32>
    %cst_8 = arith.constant -4.000000e+00 : f32
    %32 = vector.broadcast %cst_8 : f32 to vector<16x256xf32>
    %33 = arith.mulf %31, %32 : vector<16x256xf32>
    %34 = math.exp %33 : vector<16x256xf32>
    %cst_9 = arith.constant 2.000000e+00 : f32
    %35 = vector.broadcast %cst_9 : f32 to vector<16x256xf32>
    %36 = arith.mulf %34, %35 : vector<16x256xf32>
    %cst_10 = arith.constant 1.000000e+00 : f32
    %37 = vector.broadcast %cst_10 : f32 to vector<16x256xf32>
    %38 = arith.subf %36, %37 : vector<16x256xf32>
    %c0_11 = arith.constant 0 : index
    %c0_12 = arith.constant 0 : index
    %39 = vector.load %arg4[%c0_11, %c0_12] : memref<16x256xf32, #tpu.memory_space<vmem>>, vector<16x256xf32>
    tpu.vector_store %arg4[%c0_11, %c0_12], %38 {strides = array<i32>} : memref<16x256xf32, #tpu.memory_space<vmem>>, vector<16x256xf32>,
    return
  }
  func.func @transform_0(%arg0: i32) -> (i32, i32) {
    %c0_i32 = arith.constant 0 : i32
    %c0_i32_0 = arith.constant 0 : i32
    return %c0_i32, %arg0 : i32, i32
  }
  func.func @transform_1(%arg0: i32) -> (i32, i32) {
    %c0_i32 = arith.constant 0 : i32
    %c0_i32_0 = arith.constant 0 : i32
    %c0_i32_1 = arith.constant 0 : i32
    return %c0_i32, %c0_i32_0 : i32, i32
  }
  func.func @transform_2(%arg0: i32) -> (i32, i32) {
    %c0_i32 = arith.constant 0 : i32
    %c0_i32_0 = arith.constant 0 : i32
    %c0_i32_1 = arith.constant 0 : i32
    return %c0_i32, %c0_i32_0 : i32, i32
  }
  func.func @transform_3(%arg0: i32) -> (i32, i32) {
    %c0_i32 = arith.constant 0 : i32
    %c0_i32_0 = arith.constant 0 : i32
    return %c0_i32, %arg0 : i32, i32
  }
}

</mosaic_0001>

<bundles_post_ra>
// kernel: mul.10.clone
= control target key start
LH: loop header
LB: loop body
LE: loop exit
PB: predicated region body
PF: predicated region fallthrough
CT: control target
= control target key end

     0   :  { %s25_s0 = inlined_call_operand.vmem [shape: f32[8], index: 0, kind: input, shape index: {}]   ;;  %s26_s1 = inlined_call_operand.vmem [shape: f32[8,2], index: 1, kind: output, shape index: {}]  }
   0x1   :  { %v4_v0 = vld [vmem:[%s25_s0] ss:$0 sm:$0xff] }
   0x2   :  { %6 = vbcast.lane.b32.xlu0 %v4_v0, 256 }
  0x74   :  { %v7_v1 = vpop.permute.xlu0 %6 }
  0x75   :  { %8 = vst [vmem:[%s26_s1] sm:$0xff] %v7_v1 }

// kernel: radial_basis_grid_encoding.1
= control target key start
LH: loop header
LB: loop body
LE: loop exit
PB: predicated region body
PF: predicated region fallthrough
CT: control target
= control target key end

     0   :  { %s515_s12 = smov 0   ;;  %s517_s13 = smov 0   ;;  %s577_s0 = inlined_call_operand.vmem [shape: f32[2,512], index: 0, kind: input, shape index: {}]   ;;  %s578_s1 = inlined_call_operand.vmem [shape: f32[16,2], index: 1, kind: input, shape index: {}]   ;;  %s579_s2 = inlined_call_operand.vmem [shape: f32[16,1], index: 2, kind: input, shape index: {}]   ;;  %s580_s3 = inlined_call_operand.vmem [shape: f32[16,512], index: 3, kind: output, shape index: {}]  }
   0x1   :  { %s519_s14 = smov 0  }
   0x2 LB: > { %s528_s15 = sadd.s32 4294967295, %s491_s14   ;;  %s530_s16 = sadd.s32 1, %s491_s14   ;;  %s491_s14 = sphi %s519_s14, %s584_s14   ;;  %s487_s13 = sphi %s517_s13, %s583_s13   ;;  %s483_s12 = sphi %s515_s12, %s582_s12  }
   0x3   : > { %s85_s17 = ssub.s32 %s491_s14, %s530_s16  ;;  %s88_s18 = sadd.s32 1, %s487_s13 }
   0x4   : > { %p86_p0 = scmp.eq.s32.totalorder %s85_s17, 0  ;;  %p98_p1 = scmp.ne.s32.totalorder %s487_s13, %s483_s12 }
   0x5   : > { %p99_p2 = scmp.eq.s32.totalorder %s528_s15, 1  ;;  %p409_p3 = scmp.ge.s32.totalorder %s491_s14, 1 }
   0x6   : > { %s538_s19 = scalar_select %p86_p0, %s487_s13, %s88_s18  }
   0x7   : > { %p540_p4 = por %p99_p2, %p98_p1  ;;  %p138_p5 = scmp.lt.s32.totalorder %s491_s14, 3 }
   0x9   : > { %p139_p6 = pnand %p409_p3, %p138_p5 }
   0xa   : > { %s411_s29 = sshll.u32 (!%p139_p6), %s528_s15, 1  ;;  %s158_s7 = sand.u32 (!%p139_p6), 1, %s483_s12  }
   0xb   : > { %142 = sbr.rel (%p139_p6) target bundleno = 199 (0xc7), region = 32  ;;  %p162_p7 = scmp.lt.s32.totalorder (!%p139_p6), %s411_s29, 3 }
   0xc   : > { %s410_s8 = sshll.u32 (!%p139_p6), %s158_s7, 5 }
   0xd   : > { %s160_s9 = scalar_lea.vmem (!%p139_p6), [#allocation2], %s410_s8 }
  0x10   : > { %v171_v0 = vld [vmem:[%s579_s2] sm:$0xff]  ;;  %v493_v2 = vmov 0   ;;  %v172_v3 = vld [vmem:[%s579_s2 + $0x8] sm:$0xff]  ;;  %v494_v5 = vmov 1   ;;  %s586_s29 = smov (!%p162_p7, %s411_s29), 3  ;;  %v174_v6 = vlaneseq  ;;  %s430_s10 = sshll.u32 (%p540_p4), %s528_s15, 4 }
  0x11   : > { %v169_v1 = vld [vmem:[%s578_s1] sm:$0xff]  ;;  %458 = vset.pattern.permute.xlu1 %v493_v2  ;;  %457 = vset.pattern.permute.xlu0 %v493_v2  ;;  %v170_v4 = vld [vmem:[%s578_s1 + $0x8] sm:$0xff]  ;;  %s412_s30 = sshll.u32 %s586_s29, 1  ;;  %s331_s14 = scalar_lea.vmem (%p540_p4), %s580_s3, %s430_s10 }
  0x12   : > { %194 = vperm.xlu0 %457, %v171_v0   ;;  %208 = vperm.xlu1 %458, %v169_v1   ;;  %v175_v7 = vshrl.u32 %v174_v6, 7  ;;  %s165_s6 = scalar_lea.vmem %s577_s0, %s412_s30 }
  0x13   : > { %v168_v10 = vld [vmem:[%s165_s6] sm:$0xf] }
  0x14   : > { %v176_v8 = vsub.s32 0, %v175_v7  ;;  %v180_v9 = vsub.s32 2, %v175_v7  ;;  %v242_v13 = vsub.s32 1, %v175_v7  ;;  %v246_v14 = vsub.s32 3, %v175_v7 }
  0x16   : > { %199 = vperm.xlu0 %457, %v172_v3   ;;  %213 = vperm.xlu1 %458, %v170_v4   ;;  %v177_v11 = vrot.slane %v168_v10, %v176_v8  ;;  %v181_v12 = vrot.slane %v168_v10, %v180_v9  ;;  %v243_v19 = vrot.slane %v168_v10, %v242_v13 }
  0x17   : > { %v247_v20 = vrot.slane %v168_v10, %v246_v14 }
  0x18   : > { %v187_v15 = vrot.slane %v177_v11, %v176_v8  ;;  %v191_v16 = vrot.slane %v181_v12, %v176_v8  ;;  %v253_v27 = vrot.slane %v243_v19, %v242_v13 }
  0x19   : > { %v257_v28 = vrot.slane %v247_v20, %v242_v13 }
  0x1a   : > { %459 = vset.pattern.permute.xlu0 %v494_v5  ;;  %460 = vset.pattern.permute.xlu1 %v494_v5 }
  0x1b   : > { %263 = vperm.xlu0 %459, %v169_v1   ;;  %267 = vperm.xlu1 %460, %v170_v4  }
  0x8d   : > { %v195_v17 = vpop.permute.xlu0 %194  ;;  %v209_v18 = vpop.permute.xlu1 %208 }
  0x8e   : > { %v202_v21 = vmul.f32 %v195_v17, %v187_v15  ;;  %v203_v22 = vmul.f32 %v195_v17, %v191_v16  ;;  %v258_v37 = vmul.f32 %v253_v27, %v195_v17  ;;  %v259_v38 = vmul.f32 %v257_v28, %v195_v17 }
  0x90   : > { %v216_v23 = vadd.f32 %v209_v18, %v202_v21  ;;  %v217_v24 = vadd.f32 %v209_v18, %v203_v22 }
  0x91   : > { %v200_v25 = vpop.permute.xlu0 %199  ;;  %v214_v26 = vpop.permute.xlu1 %213 }
  0x92   : > { %v220_v29 = vfloor.f32 %v216_v23  ;;  %v221_v30 = vfloor.f32 %v217_v24  ;;  %v204_v31 = vmul.f32 %v200_v25, %v187_v15  ;;  %v205_v32 = vmul.f32 %v200_v25, %v191_v16 }
  0x93   : > { %v260_v39 = vmul.f32 %v253_v27, %v200_v25  ;;  %v261_v40 = vmul.f32 %v257_v28, %v200_v25 }
  0x94   : > { %v224_v33 = vsub.f32 %v216_v23, %v220_v29  ;;  %v225_v34 = vsub.f32 %v217_v24, %v221_v30  ;;  %v218_v35 = vadd.f32 %v214_v26, %v204_v31  ;;  %v219_v36 = vadd.f32 %v214_v26, %v205_v32 }
  0x96   : > { %v222_v41 = vfloor.f32 %v218_v35  ;;  %v223_v42 = vfloor.f32 %v219_v36  ;;  %v264_v43 = vpop.permute.xlu0 %263  ;;  %v268_v44 = vpop.permute.xlu1 %267  ;;  %v228_v49 = vmul.f32 2.0, %v224_v33  ;;  %v229_v50 = vmul.f32 2.0, %v225_v34 }
  0x97   : > { %v270_v45 = vadd.f32 %v264_v43, %v258_v37  ;;  %v271_v46 = vadd.f32 %v264_v43, %v259_v38  ;;  %v272_v47 = vadd.f32 %v268_v44, %v260_v39  ;;  %v273_v48 = vadd.f32 %v268_v44, %v261_v40 }
  0x98   : > { %v226_v51 = vsub.f32 %v218_v35, %v222_v41  ;;  %v227_v52 = vsub.f32 %v219_v36, %v223_v42  ;;  %v413_v63 = vadd.f32 -1.0, %v228_v49  ;;  %v414_v0 = vadd.f32 -1.0, %v229_v50 }
  0x99   : > { %v274_v53 = vfloor.f32 %v270_v45  ;;  %v275_v54 = vfloor.f32 %v271_v46  ;;  %v276_v55 = vfloor.f32 %v272_v47  ;;  %v277_v56 = vfloor.f32 %v273_v48 }
  0x9a   : > { %v230_v57 = vmul.f32 2.0, %v226_v51  ;;  %v231_v58 = vmul.f32 2.0, %v227_v52  ;;  %v236_v11 = vmul.f32 %v413_v63, %v413_v63  ;;  %v237_v12 = vmul.f32 %v414_v0, %v414_v0 }
  0x9b   : > { %v278_v59 = vsub.f32 %v270_v45, %v274_v53  ;;  %v279_v60 = vsub.f32 %v271_v46, %v275_v54  ;;  %v280_v61 = vsub.f32 %v272_v47, %v276_v55  ;;  %v281_v62 = vsub.f32 %v273_v48, %v277_v56 }
  0x9c   : > { %v415_v1 = vadd.f32 -1.0, %v230_v57  ;;  %v416_v2 = vadd.f32 -1.0, %v231_v58 }
  0x9d   : > { %v282_v3 = vmul.f32 2.0, %v278_v59  ;;  %v283_v4 = vmul.f32 2.0, %v279_v60  ;;  %v284_v5 = vmul.f32 2.0, %v280_v61  ;;  %v285_v6 = vmul.f32 2.0, %v281_v62 }
  0x9e   : > { %v238_v13 = vmul.f32 %v415_v1, %v415_v1  ;;  %v239_v14 = vmul.f32 %v416_v2, %v416_v2 }
  0x9f   : > { %v417_v7 = vadd.f32 -1.0, %v282_v3  ;;  %v418_v8 = vadd.f32 -1.0, %v283_v4  ;;  %v419_v9 = vadd.f32 -1.0, %v284_v5  ;;  %v420_v10 = vadd.f32 -1.0, %v285_v6 }
  0xa1   : > { %v290_v15 = vmul.f32 %v417_v7, %v417_v7  ;;  %v291_v16 = vmul.f32 %v418_v8, %v418_v8  ;;  %v292_v17 = vmul.f32 %v419_v9, %v419_v9  ;;  %v293_v18 = vmul.f32 %v420_v10, %v420_v10 }
  0xa3   : > { %v294_v19 = vadd.f32 %v290_v15, %v236_v11  ;;  %v295_v20 = vadd.f32 %v291_v16, %v237_v12  ;;  %v296_v21 = vadd.f32 %v292_v17, %v238_v13  ;;  %v297_v22 = vadd.f32 %v293_v18, %v239_v14 }
  0xa5   : > { %v298_v23 = vmul.f32 -4.0, %v294_v19  ;;  %v299_v24 = vmul.f32 -4.0, %v295_v20  ;;  %v300_v25 = vmul.f32 -4.0, %v296_v21  ;;  %v301_v26 = vmul.f32 -4.0, %v297_v22 }
  0xa7   : > { %v302_v27 = vmul.f32 1.442695, %v298_v23  ;;  %v304_v28 = vmul.f32 1.442695, %v299_v24  ;;  %v306_v29 = vmul.f32 1.442695, %v300_v25 }
  0xa8   : > { %v308_v30 = vmul.f32 1.442695, %v301_v26 }
  0xa9   : > { %461 = vpow2.f32 %v302_v27 }
  0xaa   : > { %463 = vpow2.f32 %v304_v28 }
  0xab   : > { %465 = vpow2.f32 %v306_v29 }
  0xac   : > { %467 = vpow2.f32 %v308_v30 }
  0xb6   : > { %v462_v31 = vpop.eup %461 }
  0xb7   : > { %v464_v32 = vpop.eup %463  ;;  %v310_v33 = vmul.f32 2.0, %v462_v31 }
  0xb8   : > { %v466_v34 = vpop.eup %465  ;;  %v311_v35 = vmul.f32 2.0, %v464_v32 }
  0xb9   : > { %v468_v36 = vpop.eup %467  ;;  %v421_v37 = vadd.f32 -1.0, %v310_v33  ;;  %v312_v38 = vmul.f32 2.0, %v466_v34 }
  0xba   : > { %v422_v39 = vadd.f32 -1.0, %v311_v35  ;;  %v313_v40 = vmul.f32 2.0, %v468_v36  ;;  %328 = sbr.rel (!%p540_p4) target bundleno = 199 (0xc7), region = 36 }
  0xbb   : > { %318 = vst [vmem:[%s160_s9] sm:$0xff] %v421_v37  ;;  %v423_v41 = vadd.f32 -1.0, %v312_v38 }
  0xbc   : > { %319 = vst [vmem:[%s160_s9 + $0x8] sm:$0xff] %v422_v39  ;;  %v424_v42 = vadd.f32 -1.0, %v313_v40 }
  0xbd   : > { %320 = vst [vmem:[%s160_s9 + $0x10] sm:$0xff] %v423_v41 }
  0xbe   : > { %321 = vst [vmem:[%s160_s9 + $0x18] sm:$0xff] %v424_v42 }
  0xc2   : > { %v344_v43 = vld [vmem:[%s160_s9] sm:$0xff] }
  0xc3   : > { %v346_v44 = vld [vmem:[%s160_s9 + $0x8] sm:$0xff]  ;;  %345 = vst [vmem:[%s331_s14] sm:$0xff] %v344_v43 }
  0xc4   : > { %v348_v45 = vld [vmem:[%s160_s9 + $0x10] sm:$0xff]  ;;  %347 = vst [vmem:[%s331_s14 + $0x8] sm:$0xff] %v346_v44 }
  0xc5   : > { %v350_v46 = vld [vmem:[%s160_s9 + $0x18] sm:$0xff]  ;;  %349 = vst [vmem:[%s331_s14 + $0x20] sm:$0xff] %v348_v45 }
  0xc6   : > { %351 = vst [vmem:[%s331_s14 + $0x28] sm:$0xff] %v350_v46 }
  0xc7 PF: > { %p10_p8 = scmp.ge.s32.totalorder %s530_s16, 4   ;;  %s582_s12 = smov %s487_s13 }
  0xc8   : > { %s583_s13 = smov %s538_s19  ;;  %s584_s14 = smov %s530_s16 }
  0xc9   :  { %12 = sbr.rel (!%p10_p8) target bundleno = 2 (0x2), region = 85 }

</bundles_post_ra>
